<compile_context>
chip_gen: v5e
topology: v5e:2x2
jax: 0.10.0
libtpu: 0.0.40
codegen_flags: <defaults>
</compile_context>

<pallas_src>
import functools
import math

import jax
import jax.numpy as jnp
from jax.experimental import pallas as pl
from jax.experimental.pallas import tpu as pltpu

_LANE = 128


def _make_kernel(R, Tm, num_tiles, tiles_per_chunk, needs_row_mask,
                 needs_tile_guard):
    shrink = (Tm % 8 == 0)

    def kernel(mask_ref, px_ref, py_ref, gx_ref, gy_ref,
               sse_ref, cnt_ref, sse_acc, cnt_acc):
        t = pl.program_id(2)                          # tile within this chunk
        g = pl.program_id(1) * tiles_per_chunk + t    # global row-tile index

        # Reset the resident accumulators at the start of each chunk's sweep.
        @pl.when(t == 0)
        def _():
            sse_acc[...] = jnp.zeros_like(sse_acc)
            cnt_acc[...] = jnp.zeros_like(cnt_acc)

        def accumulate(tail):
            m_b = mask_ref[0] != 0
            m_f = m_b.astype(jnp.float32)
            dx = gx_ref[0, 0].astype(jnp.float32) - px_ref[0, 0].astype(jnp.float32)
            dy = gy_ref[0, 0].astype(jnp.float32) - py_ref[0, 0].astype(jnp.float32)
            sq = dx * dx + dy * dy
            # Select (not multiply): inf/nan in masked-out pixels can't leak.
            wsq = jnp.where(m_b, sq, 0.0)
            if tail:
                # Only the single overhanging tile pays for the row mask.
                row = jax.lax.broadcasted_iota(jnp.int32, (Tm, _LANE), 0) + g * Tm
                ok = row < R
                m_f = jnp.where(ok, m_f, 0.0)
                wsq = jnp.where(ok, wsq, 0.0)
            if shrink:
                # Fold (Tm,128) -> (8,128): same VALU adds, ~no scratch ld/st.
                wsq = wsq.reshape(Tm // 8, 8, _LANE).sum(axis=0)
                m_f = m_f.reshape(Tm // 8, 8, _LANE).sum(axis=0)
            sse_acc[...] += wsq
            cnt_acc[...] += m_f

        if needs_row_mask:
            @pl.when(g < num_tiles - 1)
            def _():
                accumulate(False)

            @pl.when(g == num_tiles - 1)
            def _():
                accumulate(True)
        elif needs_tile_guard:
            @pl.when(g < num_tiles)
            def _():
                accumulate(False)
        else:
            accumulate(False)

        # One cross-lane reduce + narrow store per (batch, chunk).
        @pl.when(t == tiles_per_chunk - 1)
        def _():
            sse_ref[0, 0] = jnp.sum(sse_acc[...], keepdims=True)
            cnt_ref[0, 0] = jnp.sum(cnt_acc[...], keepdims=True)

    return kernel


def angular_mse(gt_flat_mask, pred_vec, gt_vec, *, row_tile=2048,
                reduce_split=None):
    """Masked mean of the x/y squared vector error (AngularMSE.forward).

    pred_vec / gt_vec may be bf16 (recommended: halves the dominant HBM
    stream; the kernel upcasts in-register).  A bool mask streams as int8.
    `row_tile`: rows (of 128 lanes) per grid step; raise to 4096-8192 on v7x
    or for bf16 inputs.  `reduce_split`: split the reduction axis into this
    many parallel chunks (auto: 2 when batch == 1, for v7x's two TCs).
    """
    B = gt_flat_mask.shape[0]
    N = math.prod(gt_flat_mask.shape[1:])
    C = pred_vec.shape[1]
    assert C >= 2, "AngularMSE expects at least 2 vector channels"

    # Contiguous (copy-free) reshapes only; no channel slicing.
    mask = gt_flat_mask.reshape(B, N)
    pred = pred_vec.reshape(B, C, N)
    gt = gt_vec.reshape(B, C, N)

    # bool -> int8 (1 B/px); any other dtype streams as-is (kernel does != 0).
    if mask.dtype == jnp.bool_:
        mask = mask.astype(jnp.int8)

    # Pad the flattened spatial axis to a lane multiple so the (rows, 128)
    # reshape is a pure bitcast; zero-padded mask keeps padded pixels inert.
    # TODO(synk): for non-128-divisible H*W these pads are HBM copies; they
    # could be removed with scalar-prefetch-driven tail masking on the lane dim.
    if N % _LANE != 0:
        pad = (-N) % _LANE
        mask = jnp.pad(mask, ((0, 0), (0, pad)))
        pred = jnp.pad(pred, ((0, 0), (0, 0), (0, pad)))
        gt = jnp.pad(gt, ((0, 0), (0, 0), (0, pad)))
        N += pad

    R = N // _LANE  # sublane rows per (batch, channel) plane
    mask = mask.reshape(B, R, _LANE)
    pred = pred.reshape(B, C, R, _LANE)
    gt = gt.reshape(B, C, R, _LANE)

    # ---- row-tile selection -------------------------------------------------
    # Bytes streamed per slab row (mask + 2 pred channels + 2 gt channels).
    bytes_per_row = _LANE * (mask.dtype.itemsize
                             + 2 * pred.dtype.itemsize
                             + 2 * gt.dtype.itemsize)
    # Cap so double-buffered input blocks stay <= ~32 MiB (fits v7x's 64 MiB
    # VMEM with headroom; fine on v5e/v6e).
    max_rows = max(32, (((32 << 20) // (2 * bytes_per_row)) // 32) * 32)
    row_tile = max(32, min(int(row_tile), max_rows))
    if R <= row_tile:
        Tm = R                       # single tile covers the whole plane
    else:
        Tm = (row_tile // 32) * 32   # multiple of 32: int8/bf16/f32 tilings divide
    num_tiles = -(-R // Tm)
    needs_row_mask = (num_tiles * Tm != R)

    # ---- optional split of the reduction axis (keeps both v7x TCs busy when
    # B is small; harmless elsewhere) ------------------------------------------
    if reduce_split is None:
        n_chunks = 2 if (B == 1 and num_tiles >= 4) else 1
    else:
        n_chunks = max(1, int(reduce_split))
    n_chunks = min(n_chunks, num_tiles)
    tiles_per_chunk = -(-num_tiles // n_chunks)
    needs_tile_guard = (n_chunks * tiles_per_chunk != num_tiles)

    def row_block(c, t):
        g = c * tiles_per_chunk + t
        if needs_tile_guard:
            # Clamp so overhanging chunk steps re-read the last valid tile
            # (their accumulation is skipped inside the kernel).
            g = jnp.minimum(g, num_tiles - 1)
        return g

    mask_spec = pl.BlockSpec((1, Tm, _LANE),
                             lambda b, c, t: (b, row_block(c, t), 0))

    def chan_spec(ch):
        # Reads one channel straight out of the full (B, C, R, 128) array:
        # no wrapper-side channel slice/copy, even when C > 2.
        return pl.BlockSpec((1, 1, Tm, _LANE),
                            lambda b, c, t: (b, ch, row_block(c, t), 0))

    out_spec = pl.BlockSpec((1, 1, 1, 1), lambda b, c, t: (b, c, 0, 0))

    acc_rows = 8 if Tm % 8 == 0 else Tm
    block_bytes = 2 * Tm * bytes_per_row  # double-buffered input blocks
    vmem_limit = int(min(max(32 << 20, block_bytes + (16 << 20)), 48 << 20))

    sse_p, cnt_p = pl.pallas_call(
        _make_kernel(R, Tm, num_tiles, tiles_per_chunk, needs_row_mask,
                     needs_tile_guard),
        out_shape=(jax.ShapeDtypeStruct((B, n_chunks, 1, 1), jnp.float32),
                   jax.ShapeDtypeStruct((B, n_chunks, 1, 1), jnp.float32)),
        grid_spec=pltpu.PrefetchScalarGridSpec(
            num_scalar_prefetch=0,
            grid=(B, n_chunks, tiles_per_chunk),
            in_specs=[mask_spec, chan_spec(0), chan_spec(1),
                      chan_spec(0), chan_spec(1)],
            out_specs=(out_spec, out_spec),
            scratch_shapes=[pltpu.VMEM((acc_rows, _LANE), jnp.float32),
                            pltpu.VMEM((acc_rows, _LANE), jnp.float32)],
        ),
        compiler_params=pltpu.CompilerParams(
            dimension_semantics=("parallel", "parallel", "arbitrary"),
            vmem_limit_bytes=vmem_limit),
    )(mask, pred, pred, gt, gt)

    sse = jnp.sum(sse_p)
    cnt = jnp.sum(cnt_p)
    # PyTorch returns 0 when the mask is empty (data-dependent -> jnp.where).
    # Note: the count is accumulated in f32 (exact up to ~2^24 masked pixels).
    return jnp.where(cnt > 0, sse / jnp.maximum(cnt, 1.0), jnp.float32(0.0))


if __name__ == "__main__":
    def ref_loss(mask, pred, gt):
        B = mask.shape[0]
        m = mask.reshape(B, -1) != 0
        dx = (gt[:, 0] - pred[:, 0]).reshape(B, -1)
        dy = (gt[:, 1] - pred[:, 1]).reshape(B, -1)
        sq = dx * dx + dy * dy
        cnt = jnp.sum(m)
        return jnp.where(cnt > 0,
                         jnp.sum(jnp.where(m, sq, 0.0)) / jnp.maximum(cnt, 1),
                         0.0)

    key = jax.random.PRNGKey(0)
    configs = [
        # (B, C, H, W, bool mask?, extra kwargs)
        dict(B=2, C=3, H=32, W=32, bool_mask=False, kwargs={}),        # C>2, f32 mask
        dict(B=2, C=2, H=20, W=20, bool_mask=True, kwargs={}),         # lane padding, int8 mask
        dict(B=1, C=2, H=136, W=128, bool_mask=True,                   # multi-tile + tail +
             kwargs=dict(row_tile=33, reduce_split=2)),                # chunk split + guard
    ]

    for cfg in configs:
        key, k_mask, k_pred, k_gt = jax.random.split(key, 4)
        B, C, H, W = cfg["B"], cfg["C"], cfg["H"], cfg["W"]
        m = jax.random.uniform(k_mask, (B, H, W)) > 0.5
        gt_flat_mask = m if cfg["bool_mask"] else m.astype(jnp.float32)
        pred_vec = jax.random.normal(k_pred, (B, C, H, W), dtype=jnp.float32)
        gt_vec = jax.random.normal(k_gt, (B, C, H, W), dtype=jnp.float32)

        fn = jax.jit(functools.partial(angular_mse, **cfg["kwargs"]))
        loss = jax.block_until_ready(fn(gt_flat_mask, pred_vec, gt_vec))
        ref = ref_loss(gt_flat_mask, pred_vec, gt_vec)
        assert jnp.allclose(loss, ref, rtol=1e-5, atol=1e-5), (cfg, loss, ref)

    print("KERNEL_OK")
</pallas_src>

<mosaic_0001>
module attributes {stable_mosaic.version = 11 : i64} {
  func.func @kernel(%arg0: i32, %arg1: i32, %arg2: i32, %arg3: memref<1x8x128xf32, #tpu.memory_space<vmem>>, %arg4: memref<1x1x8x128xf32, #tpu.memory_space<vmem>>, %arg5: memref<1x1x8x128xf32, #tpu.memory_space<vmem>>, %arg6: memref<1x1x8x128xf32, #tpu.memory_space<vmem>>, %arg7: memref<1x1x8x128xf32, #tpu.memory_space<vmem>>, %arg8: memref<1x1x1x1xf32, #tpu.memory_space<vmem>>, %arg9: memref<1x1x1x1xf32, #tpu.memory_space<vmem>>, %arg10: memref<8x128xf32, #tpu.memory_space<vmem>>, %arg11: memref<8x128xf32, #tpu.memory_space<vmem>>) attributes {dimension_semantics = [#tpu.dimension_semantics<parallel>, #tpu.dimension_semantics<parallel>, #tpu.dimension_semantics<arbitrary>], iteration_bounds = array<i64: 2, 1, 1>, scalar_prefetch = 0 : i64, scratch_operands = 2 : i64, tpu.core_type = #tpu.core_type<tc>, window_params = [{transform_indices = @transform_0, window_bounds = array<i64: 1, 8, 128>}, {transform_indices = @transform_1, window_bounds = array<i64: 1, 1, 8, 128>}, {transform_indices = @transform_2, window_bounds = array<i64: 1, 1, 8, 128>}, {transform_indices = @transform_3, window_bounds = array<i64: 1, 1, 8, 128>}, {transform_indices = @transform_4, window_bounds = array<i64: 1, 1, 8, 128>}, {transform_indices = @transform_5, window_bounds = array<i64: 1, 1, 1, 1>}, {transform_indices = @transform_6, window_bounds = array<i64: 1, 1, 1, 1>}]} {
    %c0_i32 = arith.constant 0 : i32
    %0 = arith.cmpi eq, %arg2, %c0_i32 : i32
    %1 = arith.extui %0 : i1 to i32
    %c0_i32_0 = arith.constant 0 : i32
    %2 = arith.cmpi ne, %1, %c0_i32_0 : i32
    scf.if %2 {
      %cst_32 = arith.constant 0.000000e+00 : f32
      %37 = vector.broadcast %cst_32 : f32 to vector<8x128xf32>
      %c0_33 = arith.constant 0 : index
      %c0_34 = arith.constant 0 : index
      %38 = vector.load %arg10[%c0_33, %c0_34] : memref<8x128xf32, #tpu.memory_space<vmem>>, vector<8x128xf32>
      tpu.vector_store %arg10[%c0_33, %c0_34], %37 {strides = array<i32>} : memref<8x128xf32, #tpu.memory_space<vmem>>, vector<8x128xf32>,
      %cst_35 = arith.constant 0.000000e+00 : f32
      %39 = vector.broadcast %cst_35 : f32 to vector<8x128xf32>
      %c0_36 = arith.constant 0 : index
      %c0_37 = arith.constant 0 : index
      %40 = vector.load %arg11[%c0_36, %c0_37] : memref<8x128xf32, #tpu.memory_space<vmem>>, vector<8x128xf32>
      tpu.vector_store %arg11[%c0_36, %c0_37], %39 {strides = array<i32>} : memref<8x128xf32, #tpu.memory_space<vmem>>, vector<8x128xf32>,
    } else {
    }
    %c0 = arith.constant 0 : index
    %c0_1 = arith.constant 0 : index
    %c0_2 = arith.constant 0 : index
    %3 = vector.load %arg3[%c0, %c0_1, %c0_2] : memref<1x8x128xf32, #tpu.memory_space<vmem>>, vector<1x8x128xf32>
    %4 = vector.shape_cast %3 : vector<1x8x128xf32> to vector<8x128xf32>
    %cst = arith.constant 0.000000e+00 : f32
    %5 = vector.broadcast %cst : f32 to vector<8x128xf32>
    %6 = arith.cmpf one, %4, %5 : vector<8x128xf32>
    %7 = arith.extui %6 : vector<8x128xi1> to vector<8x128xi32>
    %8 = arith.sitofp %7 : vector<8x128xi32> to vector<8x128xf32>
    %c0_3 = arith.constant 0 : index
    %c0_4 = arith.constant 0 : index
    %c0_5 = arith.constant 0 : index
    %c0_6 = arith.constant 0 : index
    %9 = vector.load %arg6[%c0_3, %c0_4, %c0_5, %c0_6] : memref<1x1x8x128xf32, #tpu.memory_space<vmem>>, vector<1x1x8x128xf32>
    %10 = vector.shape_cast %9 : vector<1x1x8x128xf32> to vector<8x128xf32>
    %c0_7 = arith.constant 0 : index
    %c0_8 = arith.constant 0 : index
    %c0_9 = arith.constant 0 : index
    %c0_10 = arith.constant 0 : index
    %11 = vector.load %arg4[%c0_7, %c0_8, %c0_9, %c0_10] : memref<1x1x8x128xf32, #tpu.memory_space<vmem>>, vector<1x1x8x128xf32>
    %12 = vector.shape_cast %11 : vector<1x1x8x128xf32> to vector<8x128xf32>
    %13 = arith.subf %10, %12 : vector<8x128xf32>
    %c0_11 = arith.constant 0 : index
    %c0_12 = arith.constant 0 : index
    %c0_13 = arith.constant 0 : index
    %c0_14 = arith.constant 0 : index
    %14 = vector.load %arg7[%c0_11, %c0_12, %c0_13, %c0_14] : memref<1x1x8x128xf32, #tpu.memory_space<vmem>>, vector<1x1x8x128xf32>
    %15 = vector.shape_cast %14 : vector<1x1x8x128xf32> to vector<8x128xf32>
    %c0_15 = arith.constant 0 : index
    %c0_16 = arith.constant 0 : index
    %c0_17 = arith.constant 0 : index
    %c0_18 = arith.constant 0 : index
    %16 = vector.load %arg5[%c0_15, %c0_16, %c0_17, %c0_18] : memref<1x1x8x128xf32, #tpu.memory_space<vmem>>, vector<1x1x8x128xf32>
    %17 = vector.shape_cast %16 : vector<1x1x8x128xf32> to vector<8x128xf32>
    %18 = arith.subf %15, %17 : vector<8x128xf32>
    %19 = arith.mulf %13, %13 : vector<8x128xf32>
    %20 = arith.mulf %18, %18 : vector<8x128xf32>
    %21 = arith.addf %19, %20 : vector<8x128xf32>
    %cst_19 = arith.constant 0.000000e+00 : f32
    %22 = vector.broadcast %cst_19 : f32 to vector<8x128xf32>
    %23 = arith.select %6, %21, %22 : vector<8x128xi1>, vector<8x128xf32>
    %24 = vector.shape_cast %23 : vector<8x128xf32> to vector<1x8x128xf32>
    %cst_20 = arith.constant dense<0.000000e+00> : vector<8x128xf32>
    %25 = vector.multi_reduction <add>, %24, %cst_20 [0] : vector<1x8x128xf32> to vector<8x128xf32>
    %26 = vector.shape_cast %8 : vector<8x128xf32> to vector<1x8x128xf32>
    %cst_21 = arith.constant dense<0.000000e+00> : vector<8x128xf32>
    %27 = vector.multi_reduction <add>, %26, %cst_21 [0] : vector<1x8x128xf32> to vector<8x128xf32>
    %c0_22 = arith.constant 0 : index
    %c0_23 = arith.constant 0 : index
    %28 = vector.load %arg10[%c0_22, %c0_23] : memref<8x128xf32, #tpu.memory_space<vmem>>, vector<8x128xf32>
    %29 = arith.addf %28, %25 : vector<8x128xf32>
    %c0_24 = arith.constant 0 : index
    %c0_25 = arith.constant 0 : index
    %30 = vector.load %arg10[%c0_24, %c0_25] : memref<8x128xf32, #tpu.memory_space<vmem>>, vector<8x128xf32>
    tpu.vector_store %arg10[%c0_24, %c0_25], %29 {strides = array<i32>} : memref<8x128xf32, #tpu.memory_space<vmem>>, vector<8x128xf32>,
    %c0_26 = arith.constant 0 : index
    %c0_27 = arith.constant 0 : index
    %31 = vector.load %arg11[%c0_26, %c0_27] : memref<8x128xf32, #tpu.memory_space<vmem>>, vector<8x128xf32>
    %32 = arith.addf %31, %27 : vector<8x128xf32>
    %c0_28 = arith.constant 0 : index
    %c0_29 = arith.constant 0 : index
    %33 = vector.load %arg11[%c0_28, %c0_29] : memref<8x128xf32, #tpu.memory_space<vmem>>, vector<8x128xf32>
    tpu.vector_store %arg11[%c0_28, %c0_29], %32 {strides = array<i32>} : memref<8x128xf32, #tpu.memory_space<vmem>>, vector<8x128xf32>,
    %c0_i32_30 = arith.constant 0 : i32
    %34 = arith.cmpi eq, %arg2, %c0_i32_30 : i32
    %35 = arith.extui %34 : i1 to i32
    %c0_i32_31 = arith.constant 0 : i32
    %36 = arith.cmpi ne, %35, %c0_i32_31 : i32
    scf.if %36 {
      %c0_32 = arith.constant 0 : index
      %c0_33 = arith.constant 0 : index
      %37 = vector.load %arg10[%c0_32, %c0_33] : memref<8x128xf32, #tpu.memory_space<vmem>>, vector<8x128xf32>
      %38 = vector.shape_cast %37 : vector<8x128xf32> to vector<1x8x128xf32>
      %cst_34 = arith.constant dense<0.000000e+00> : vector<1xf32>
      %39 = vector.multi_reduction <add>, %38, %cst_34 [1, 2] : vector<1x8x128xf32> to vector<1xf32>
      %40 = vector.shape_cast %39 : vector<1xf32> to vector<1x1x1xf32>
      %41 = vector.extract %40[0, 0, 0] : f32 from vector<1x1x1xf32>
      %42 = vector.broadcast %41 : f32 to vector<1x1xf32>
      %c0_35 = arith.constant 0 : index
      %c0_36 = arith.constant 0 : index
      %c0_37 = arith.constant 0 : index
      %c0_38 = arith.constant 0 : index
      %43 = vector.load %arg8[%c0_35, %c0_36, %c0_37, %c0_38] : memref<1x1x1x1xf32, #tpu.memory_space<vmem>>, vector<1x1x1x1xf32>
      %44 = vector.shape_cast %43 : vector<1x1x1x1xf32> to vector<1x1xf32>
      %45 = vector.shape_cast %42 : vector<1x1xf32> to vector<1x1x1x1xf32>
      tpu.vector_store %arg8[%c0_35, %c0_36, %c0_37, %c0_38], %45 {strides = array<i32>} : memref<1x1x1x1xf32, #tpu.memory_space<vmem>>, vector<1x1x1x1xf32>,
      %c0_39 = arith.constant 0 : index
      %c0_40 = arith.constant 0 : index
      %46 = vector.load %arg11[%c0_39, %c0_40] : memref<8x128xf32, #tpu.memory_space<vmem>>, vector<8x128xf32>
      %47 = vector.shape_cast %46 : vector<8x128xf32> to vector<1x8x128xf32>
      %cst_41 = arith.constant dense<0.000000e+00> : vector<1xf32>
      %48 = vector.multi_reduction <add>, %47, %cst_41 [1, 2] : vector<1x8x128xf32> to vector<1xf32>
      %49 = vector.shape_cast %48 : vector<1xf32> to vector<1x1x1xf32>
      %50 = vector.extract %49[0, 0, 0] : f32 from vector<1x1x1xf32>
      %51 = vector.broadcast %50 : f32 to vector<1x1xf32>
      %c0_42 = arith.constant 0 : index
      %c0_43 = arith.constant 0 : index
      %c0_44 = arith.constant 0 : index
      %c0_45 = arith.constant 0 : index
      %52 = vector.load %arg9[%c0_42, %c0_43, %c0_44, %c0_45] : memref<1x1x1x1xf32, #tpu.memory_space<vmem>>, vector<1x1x1x1xf32>
      %53 = vector.shape_cast %52 : vector<1x1x1x1xf32> to vector<1x1xf32>
      %54 = vector.shape_cast %51 : vector<1x1xf32> to vector<1x1x1x1xf32>
      tpu.vector_store %arg9[%c0_42, %c0_43, %c0_44, %c0_45], %54 {strides = array<i32>} : memref<1x1x1x1xf32, #tpu.memory_space<vmem>>, vector<1x1x1x1xf32>,
    } else {
    }
    return
  }
  func.func @transform_0(%arg0: i32, %arg1: i32, %arg2: i32) -> (i32, i32, i32) {
    %c1_i32 = arith.constant 1 : i32
    %0 = arith.muli %arg1, %c1_i32 : i32
    %1 = arith.addi %0, %arg2 : i32
    %c0_i32 = arith.constant 0 : i32
    %c0_i32_0 = arith.constant 0 : i32
    return %arg0, %1, %c0_i32 : i32, i32, i32
  }
  func.func @transform_1(%arg0: i32, %arg1: i32, %arg2: i32) -> (i32, i32, i32, i32) {
    %c1_i32 = arith.constant 1 : i32
    %0 = arith.muli %arg1, %c1_i32 : i32
    %1 = arith.addi %0, %arg2 : i32
    %c0_i32 = arith.constant 0 : i32
    %c0_i32_0 = arith.constant 0 : i32
    %c0_i32_1 = arith.constant 0 : i32
    return %arg0, %c0_i32, %1, %c0_i32_0 : i32, i32, i32, i32
  }
  func.func @transform_2(%arg0: i32, %arg1: i32, %arg2: i32) -> (i32, i32, i32, i32) {
    %c1_i32 = arith.constant 1 : i32
    %0 = arith.muli %arg1, %c1_i32 : i32
    %1 = arith.addi %0, %arg2 : i32
    %c1_i32_0 = arith.constant 1 : i32
    %c0_i32 = arith.constant 0 : i32
    %c0_i32_1 = arith.constant 0 : i32
    return %arg0, %c1_i32_0, %1, %c0_i32 : i32, i32, i32, i32
  }
  func.func @transform_3(%arg0: i32, %arg1: i32, %arg2: i32) -> (i32, i32, i32, i32) {
    %c1_i32 = arith.constant 1 : i32
    %0 = arith.muli %arg1, %c1_i32 : i32
    %1 = arith.addi %0, %arg2 : i32
    %c0_i32 = arith.constant 0 : i32
    %c0_i32_0 = arith.constant 0 : i32
    %c0_i32_1 = arith.constant 0 : i32
    return %arg0, %c0_i32, %1, %c0_i32_0 : i32, i32, i32, i32
  }
  func.func @transform_4(%arg0: i32, %arg1: i32, %arg2: i32) -> (i32, i32, i32, i32) {
    %c1_i32 = arith.constant 1 : i32
    %0 = arith.muli %arg1, %c1_i32 : i32
    %1 = arith.addi %0, %arg2 : i32
    %c1_i32_0 = arith.constant 1 : i32
    %c0_i32 = arith.constant 0 : i32
    %c0_i32_1 = arith.constant 0 : i32
    return %arg0, %c1_i32_0, %1, %c0_i32 : i32, i32, i32, i32
  }
  func.func @transform_5(%arg0: i32, %arg1: i32, %arg2: i32) -> (i32, i32, i32, i32) {
    %c0_i32 = arith.constant 0 : i32
    %c0_i32_0 = arith.constant 0 : i32
    %c0_i32_1 = arith.constant 0 : i32
    return %arg0, %arg1, %c0_i32, %c0_i32_0 : i32, i32, i32, i32
  }
  func.func @transform_6(%arg0: i32, %arg1: i32, %arg2: i32) -> (i32, i32, i32, i32) {
    %c0_i32 = arith.constant 0 : i32
    %c0_i32_0 = arith.constant 0 : i32
    %c0_i32_1 = arith.constant 0 : i32
    return %arg0, %arg1, %c0_i32, %c0_i32_0 : i32, i32, i32, i32
  }
}

</mosaic_0001>

<bundles_post_ra>
// kernel: angular_mse.1
= control target key start
LH: loop header
LB: loop body
LE: loop exit
PB: predicated region body
PF: predicated region fallthrough
CT: control target
= control target key end

     0   :  { %s810_s21 = smov 0   ;;  %s812_s22 = smov 0   ;;  %s864_s0 = inlined_call_operand.vmem [shape: f32[2,8,128], index: 0, kind: input, shape index: {}]   ;;  %s865_s1 = inlined_call_operand.vmem [shape: f32[2,3,8,128], index: 1, kind: input, shape index: {}, may-alias: {1,2}]   ;;  %s866_s2 = inlined_call_operand.vmem [shape: f32[2,3,8,128], index: 2, kind: input, shape index: {}, may-alias: {1,2}]   ;;  %s867_s3 = inlined_call_operand.vmem [shape: f32[2,3,8,128], index: 3, kind: input, shape index: {}, may-alias: {3,4}]   ;;  %s868_s4 = inlined_call_operand.vmem [shape: f32[2,3,8,128], index: 4, kind: input, shape index: {}, may-alias: {3,4}]   ;;  %s869_s5 = inlined_call_operand.vmem [shape: f32[2,1,1,1], index: 5, kind: output, shape index: {0}]   ;;  %s870_s6 = inlined_call_operand.vmem [shape: f32[2,1,1,1], index: 6, kind: output, shape index: {1}]  }
   0x1   :  { %s814_s23 = smov 0  }
   0x2 LB: > { %s36_s24 = sadd.s32 1, %s768_s22  ;;  %p709_p0 = scmp.ge.s32.totalorder %s772_s23, 1  ;;  %s772_s23 = sphi %s814_s23, %s17_s23   ;;  %s768_s22 = sphi %s812_s22, %s872_s22   ;;  %s764_s21 = sphi %s810_s21, %s871_s21  }
   0x3   : > { %p38_p1 = scmp.ge.s32.totalorder %s36_s24, 2  ;;  %p324_p2 = scmp.lt.s32.totalorder %s772_s23, 3 }
   0x5   : > { %s874_s24 = smov (%p38_p1, %s36_s24), 0  ;;  %p325_p3 = pnand %p709_p0, %p324_p2 }
   0x6   : > { %p403_p4 = scmp.lt.s32.totalorder (!%p325_p3), %s764_s21, 1 }
   0x7   : > { %328 = sbr.rel (%p325_p3) target bundleno = 213 (0xd5), region = 40 }
   0xc   : > { %s876_s21 = smov (!%p403_p4, %s764_s21), 1  ;;  %v774_v11 = vmov 0.0   ;;  %vm507_vm1 = vcmask 0  }
   0xd   : > { %s710_s25 = sshll.u32 %s876_s21, 3  ;;  %s720_s26 = smul.u32 24, %s876_s21 }
   0xe   : > { %s409_s29 = scalar_lea.vmem %s864_s0, %s710_s25  ;;  %s458_s20 = scalar_lea.vmem %s869_s5, %s876_s21 }
   0xf   : > { %s419_s8 = scalar_lea.vmem %s865_s1, %s720_s26  ;;  %s618_s11 = scalar_lea.vmem %s866_s2, %s720_s26  ;;  %v471_v4 = vld [vmem:[%s409_s29] sm:$0xff] }
  0x10   : > { %s440_s14 = scalar_lea.vmem %s867_s3, %s720_s26  ;;  %s627_s17 = scalar_lea.vmem %s868_s4, %s720_s26  ;;  %v476_v0 = vld [vmem:[%s419_s8] sm:$0xff]  ;;  %v717_v1 = vld [vmem:[%s618_s11 + $0x8] sm:$0xff]  ;;  %vm472_vm0 = vcmp.ne.f32.partialorder %v471_v4, 0.0 }
  0x11   : > { %v475_v2 = vld [vmem:[%s440_s14] sm:$0xff]  ;;  %v716_v3 = vld [vmem:[%s627_s17 + $0x8] sm:$0xff]  ;;  %v715_v12 = vsel %vm472_vm0, 1.0, %v774_v11  ;;  %s464_s28 = scalar_lea.vmem %s870_s6, %s876_s21 }
  0x12   : > { %v477_v5 = vsub.f32 %v475_v2, %v476_v0  ;;  %v480_v6 = vsub.f32 %v716_v3, %v717_v1 }
  0x14   : > { %v481_v7 = vmul.f32 %v477_v5, %v477_v5  ;;  %v482_v8 = vmul.f32 %v480_v6, %v480_v6 }
  0x16   : > { %v483_v9 = vadd.f32 %v482_v8, %v481_v7 }
  0x18   : > { %v484_v10 = vsel %vm472_vm0, %v483_v9, 0.0 }
  0x19   : > { %497 = vadd.xlane.f32.xlu0 %v484_v10 }
  0x21   : > { %510 = vadd.xlane.f32.xlu0 %v715_v12 }
  0x8c   : > { %v498_v13 = vpop.xlane.xlu0 %497 }
  0x8d   : > { %v499_v14 = vrot.slane %v498_v13, 4 }
  0x8f   : > { %v500_v15 = vadd.f32 %v499_v14, %v498_v13 }
  0x91   : > { %v501_v16 = vrot.slane %v500_v15, 2 }
  0x93   : > { %v502_v17 = vadd.f32 %v501_v16, %v500_v15 }
  0x94   : > { %v511_v18 = vpop.xlane.xlu0 %510 }
  0x95   : > { %v512_v19 = vrot.slane %v511_v18, 4  ;;  %v503_v20 = vrot.slane %v502_v17, 1 }
  0x97   : > { %v513_v21 = vadd.f32 %v512_v19, %v511_v18  ;;  %v504_v22 = vadd.f32 %v503_v20, %v502_v17 }
  0x99   : > { %v514_v23 = vrot.slane %v513_v21, 2  ;;  %721 = vpush %v504_v22 }
  0x9b   : > { %v515_v24 = vadd.f32 %v514_v23, %v513_v21 }
  0x9d   : > { %v516_v25 = vrot.slane %v515_v24, 1 }
  0x9f   : > { %v517_v26 = vadd.f32 %v516_v25, %v515_v24 }
  0xa1   : > { %723 = vpush %v517_v26 }
  0xca   : > { %s722_s25 = spop %721 }
  0xcb   : > { %v506_v27 = vstv %s722_s25 }
  0xcc   : > { %508 = vst.msk [vmem:[%s458_s20] sm:$0x1] %vm507_vm1, %v506_v27 }
  0xd2   : > { %s724_s29 = spop %723 }
  0xd3   : > { %v519_v28 = vstv %s724_s29 }
  0xd4   : > { %520 = vst.msk [vmem:[%s464_s28] sm:$0x1] %vm507_vm1, %v519_v28 }
  0xd5 PF: > { %s17_s23 = sadd.s32 1, %s772_s23   ;;  %s871_s21 = smov %s768_s22 }
  0xd6   : > { %p14_p5 = scmp.ge.s32.totalorder %s17_s23, 4   ;;  %s872_s22 = smov %s874_s24 }
  0xd8   :  { %16 = sbr.rel (!%p14_p5) target bundleno = 2 (0x2), region = 102 }

</bundles_post_ra>
